<compile_context>
chip_gen: v6e
topology: v6e:2x2x1
jax: 0.10.0
libtpu: 0.0.40
codegen_flags: <defaults>
</compile_context>

<pallas_src>
import jax
import jax.numpy as jnp
import numpy as np
from jax import lax
from jax.experimental import pallas as pl
from jax.experimental.pallas import tpu as pltpu


# Tap order: t = kh*3 + kw, with (dh, dw) = (kh-1, kw-1).
_TAP_OFFSETS = tuple((kh - 1, kw - 1) for kh in range(3) for kw in range(3))


def _make_tap_masks(H, W):
    """{0,1} validity mask per 3x3 tap over the flattened (H*W,) spatial axis."""
    HW = H * W
    r, c = np.divmod(np.arange(HW), W)
    masks = np.zeros((9, 1, HW), np.float32)
    for t, (dh, dw) in enumerate(_TAP_OFFSETS):
        valid = (r + dh >= 0) & (r + dh < H) & (c + dw >= 0) & (c + dw < W)
        masks[t, 0, :] = valid
    return jnp.asarray(masks)


def _make_fused_conv_kernel(num_blocks, H, W):
    """Chain of conv3x3(stride=1, pad=1) + bias + ReLU on one batch element.

    Ref order (as passed by pallas_call):
      x_ref                              (1, C0, H*W)       f32
      mask_ref                           (9, 1, H*W)        f32  {0,1} validity
      w_0, b_0, ..., w_{k-1}, b_{k-1}    (9, C_{i+1}, C_i)  f32 / (C_{i+1}, 1) f32
      o_ref                              (1, C_k, H*W)      f32  (lane-dense)
    """
    HW = H * W

    def kernel(x_ref, mask_ref, *refs):
        wb = refs[: 2 * num_blocks]
        o_ref = refs[2 * num_blocks]

        cur = x_ref[0]                                    # (Cin, HW) f32
        for blk in range(num_blocks):
            w_ref = wb[2 * blk]                           # (9, Cout, Cin)
            b_ref = wb[2 * blk + 1]                       # (Cout, 1)
            cout = w_ref.shape[1]

            acc = jnp.zeros((cout, HW), jnp.float32)
            for t, (dh, dw) in enumerate(_TAP_OFFSETS):
                off = dh * W + dw                         # lane shift of this tap
                if off == 0:
                    tap = cur                             # centre tap: no shift/mask
                else:
                    # roll follows jnp.roll semantics (out[p] = in[(p-shift)%HW]),
                    # so shift=(-off)%HW gives out[p] = in[p+off]; wrapped or
                    # cross-row lanes are zeroed by the precomputed mask.
                    tap = pltpu.roll(cur, (-off) % HW, axis=1)
                    tap = tap * mask_ref[t]               # (Cin,HW) * (1,HW)
                acc = acc + jnp.dot(w_ref[t], tap,
                                    preferred_element_type=jnp.float32)
            cur = jnp.maximum(acc + b_ref[...], 0.0)      # bias + ReLU (VPU)

        o_ref[0] = cur                                    # full-width, unmasked store

    return kernel


def _build_fused_forward(chans, H, W):
    """Builds a jitted forward(x_nchw, masks, *params) for a fixed chain/size."""
    num_blocks = len(chans) - 1
    HW = H * W
    kernel = _make_fused_conv_kernel(num_blocks, H, W)

    in_specs = [
        pl.BlockSpec((1, chans[0], HW), lambda n: (n, 0, 0)),   # x: one image
        pl.BlockSpec((9, 1, HW), lambda n: (0, 0, 0)),          # tap masks (shared)
    ]
    for i in range(num_blocks):
        cin, cout = chans[i], chans[i + 1]
        in_specs.append(pl.BlockSpec((9, cout, cin), lambda n: (0, 0, 0)))
        in_specs.append(pl.BlockSpec((cout, 1), lambda n: (0, 0)))
    cout_last = chans[-1]

    @jax.jit
    def forward(x_nchw, masks, *params):
        N = x_nchw.shape[0]
        x = x_nchw.reshape(N, chans[0], HW)        # free reshape, stays NCHW-ordered
        out = pl.pallas_call(
            kernel,
            out_shape=jax.ShapeDtypeStruct((N, cout_last, HW), jnp.float32),
            grid_spec=pltpu.PrefetchScalarGridSpec(
                num_scalar_prefetch=0,
                grid=(N,),
                in_specs=in_specs,
                out_specs=pl.BlockSpec((1, cout_last, HW), lambda n: (n, 0, 0)),
            ),
            compiler_params=pltpu.CompilerParams(
                dimension_semantics=("parallel",),
            ),
        )(x, masks, *params)
        return out.reshape(N, cout_last, H, W)     # free reshape back to NCHW

    return forward


class FeatureExtractor:
    """JAX port of the PyTorch FeatureExtractor wrapper.

    sub_module: dict name -> child; the 'base' child is an ordered dict of
    block_name -> (weight, bias) for conv3x3(stride=1, pad=1)+ReLU blocks,
    weight in HWIO layout (3, 3, Cin, Cout), bias (Cout,).
    """

    def __init__(self, sub_module, extracted_layers):
        self.sub_module = sub_module
        self.extracted_layers = extracted_layers

        # Hoisted out of forward (perf review): repack the weights of the chain
        # that feeds outputs[0] once, at construction time.
        self._params = None
        self._chans = None
        for name, module in sub_module.items():
            if name != "base":
                # TODO(synk): non-'base' children are ignored, exactly as in the
                # PyTorch forward (only 'base' blocks are executed).
                continue
            params, chans = [], None
            for block_name, (w, b) in module.items():
                cin, cout = int(w.shape[2]), int(w.shape[3])
                if chans is None:
                    chans = [cin]
                w9 = jnp.transpose(jnp.asarray(w, jnp.float32),
                                   (0, 1, 3, 2)).reshape(9, cout, cin)
                b2 = jnp.asarray(b, jnp.float32).reshape(cout, 1)
                params += [w9, b2]
                chans.append(cout)
                if block_name in self.extracted_layers:
                    self._params, self._chans = params, tuple(chans)
                    break
            break
        self._cache = {}   # (H, W) -> (jitted forward, tap masks)

    def forward(self, x):
        if self._params is None:
            # Mirrors the IndexError PyTorch raises on outputs[0] if nothing matched.
            raise IndexError("extracted_layers matched no block in 'base'")
        _, _, H, W = x.shape
        if (H, W) not in self._cache:
            self._cache[(H, W)] = (_build_fused_forward(self._chans, H, W),
                                   _make_tap_masks(H, W))
        fwd, masks = self._cache[(H, W)]
        return fwd(x, masks, *self._params)


def _reference_conv3x3_relu_nchw(x, w, b):
    y = lax.conv_general_dilated(
        x, w, window_strides=(1, 1), padding="SAME",
        dimension_numbers=("NCHW", "HWIO", "NCHW"))
    return jnp.maximum(y + b.reshape(1, -1, 1, 1), 0.0)


if __name__ == "__main__":
    key = jax.random.PRNGKey(0)
    k_x, k_w1, k_b1, k_w2, k_b2 = jax.random.split(key, 5)

    N, Cin, H, W = 2, 4, 16, 16
    C1, C2 = 8, 16

    # Deterministic synthetic parameters (HWIO layout for the kernel).
    w1 = jax.random.normal(k_w1, (3, 3, Cin, C1), jnp.float32) * 0.1
    b1 = jax.random.normal(k_b1, (C1,), jnp.float32) * 0.1
    w2 = jax.random.normal(k_w2, (3, 3, C1, C2), jnp.float32) * 0.1
    b2 = jax.random.normal(k_b2, (C2,), jnp.float32) * 0.1

    sub_module = {
        "base": {
            "block1": (w1, b1),
            "block2": (w2, b2),
        },
    }
    extractor = FeatureExtractor(sub_module, extracted_layers=["block2"])

    x = jax.random.normal(k_x, (N, Cin, H, W), jnp.float32)   # NCHW, like PyTorch

    out = jax.block_until_ready(extractor.forward(x))
    assert out.shape == (N, C2, H, W), out.shape

    # Full-f32 kernel, so parity with the XLA conv reference should be tight.
    r1 = _reference_conv3x3_relu_nchw(x, w1, b1)
    ref = _reference_conv3x3_relu_nchw(r1, w2, b2)
    assert jnp.allclose(out, ref, rtol=1e-4, atol=1e-4), float(
        jnp.max(jnp.abs(out - ref)))

    print("KERNEL_OK")
</pallas_src>

<mosaic_0001>
module attributes {stable_mosaic.version = 11 : i64} {
  func.func @kernel(%arg0: i32, %arg1: memref<1x4x256xf32, #tpu.memory_space<vmem>>, %arg2: memref<9x1x256xf32, #tpu.memory_space<vmem>>, %arg3: memref<9x8x4xf32, #tpu.memory_space<vmem>>, %arg4: memref<8x1xf32, #tpu.memory_space<vmem>>, %arg5: memref<9x16x8xf32, #tpu.memory_space<vmem>>, %arg6: memref<16x1xf32, #tpu.memory_space<vmem>>, %arg7: memref<1x16x256xf32, #tpu.memory_space<vmem>>) attributes {dimension_semantics = [#tpu.dimension_semantics<parallel>], iteration_bounds = array<i64: 2>, scalar_prefetch = 0 : i64, scratch_operands = 0 : i64, tpu.core_type = #tpu.core_type<tc>, window_params = [{transform_indices = @transform_0, window_bounds = array<i64: 1, 4, 256>}, {pipeline_mode = #tpu.pipeline_mode<synchronous>, transform_indices = @transform_1, window_bounds = array<i64: 9, 1, 256>}, {pipeline_mode = #tpu.pipeline_mode<synchronous>, transform_indices = @transform_2, window_bounds = array<i64: 9, 8, 4>}, {pipeline_mode = #tpu.pipeline_mode<synchronous>, transform_indices = @transform_3, window_bounds = array<i64: 8, 1>}, {pipeline_mode = #tpu.pipeline_mode<synchronous>, transform_indices = @transform_4, window_bounds = array<i64: 9, 16, 8>}, {pipeline_mode = #tpu.pipeline_mode<synchronous>, transform_indices = @transform_5, window_bounds = array<i64: 16, 1>}, {transform_indices = @transform_6, window_bounds = array<i64: 1, 16, 256>}]} {
    %c0 = arith.constant 0 : index
    %c0_0 = arith.constant 0 : index
    %c0_1 = arith.constant 0 : index
    %0 = vector.load %arg1[%c0, %c0_0, %c0_1] : memref<1x4x256xf32, #tpu.memory_space<vmem>>, vector<1x4x256xf32>
    %1 = vector.shape_cast %0 : vector<1x4x256xf32> to vector<4x256xf32>
    %cst = arith.constant 0.000000e+00 : f32
    %2 = vector.broadcast %cst : f32 to vector<8x256xf32>
    %c17_i32 = arith.constant 17 : i32
    %3 = tpu.dynamic_rotate %1 by %c17_i32 dim 1 : vector<4x256xf32>, i32 -> vector<4x256xf32>
    %c0_2 = arith.constant 0 : index
    %c0_3 = arith.constant 0 : index
    %c0_4 = arith.constant 0 : index
    %4 = vector.load %arg2[%c0_2, %c0_3, %c0_4] : memref<9x1x256xf32, #tpu.memory_space<vmem>>, vector<1x1x256xf32>
    %5 = vector.shape_cast %4 : vector<1x1x256xf32> to vector<1x256xf32>
    %6 = vector.broadcast %5 : vector<1x256xf32> to vector<4x256xf32>
    %7 = arith.mulf %3, %6 : vector<4x256xf32>
    %c0_5 = arith.constant 0 : index
    %c0_6 = arith.constant 0 : index
    %c0_7 = arith.constant 0 : index
    %8 = vector.load %arg3[%c0_5, %c0_6, %c0_7] : memref<9x8x4xf32, #tpu.memory_space<vmem>>, vector<1x8x4xf32>
    %9 = vector.shape_cast %8 : vector<1x8x4xf32> to vector<8x4xf32>
    %cst_8 = arith.constant dense<0.000000e+00> : vector<8x256xf32>
    %10 = tpu.matmul %9, %7, %cst_8 {dimension_numbers = #tpu.dot_dimension_numbers<[1], [0], [0], [1], [0, 0, 1, 1], [], []>} : vector<8x4xf32>, vector<4x256xf32>, vector<8x256xf32> -> vector<8x256xf32>
    %11 = arith.addf %2, %10 : vector<8x256xf32>
    %c16_i32 = arith.constant 16 : i32
    %12 = tpu.dynamic_rotate %1 by %c16_i32 dim 1 : vector<4x256xf32>, i32 -> vector<4x256xf32>
    %c1 = arith.constant 1 : index
    %c0_9 = arith.constant 0 : index
    %c0_10 = arith.constant 0 : index
    %13 = vector.load %arg2[%c1, %c0_9, %c0_10] : memref<9x1x256xf32, #tpu.memory_space<vmem>>, vector<1x1x256xf32>
    %14 = vector.shape_cast %13 : vector<1x1x256xf32> to vector<1x256xf32>
    %15 = vector.broadcast %14 : vector<1x256xf32> to vector<4x256xf32>
    %16 = arith.mulf %12, %15 : vector<4x256xf32>
    %c1_11 = arith.constant 1 : index
    %c0_12 = arith.constant 0 : index
    %c0_13 = arith.constant 0 : index
    %17 = vector.load %arg3[%c1_11, %c0_12, %c0_13] : memref<9x8x4xf32, #tpu.memory_space<vmem>>, vector<1x8x4xf32>
    %18 = vector.shape_cast %17 : vector<1x8x4xf32> to vector<8x4xf32>
    %cst_14 = arith.constant dense<0.000000e+00> : vector<8x256xf32>
    %19 = tpu.matmul %18, %16, %cst_14 {dimension_numbers = #tpu.dot_dimension_numbers<[1], [0], [0], [1], [0, 0, 1, 1], [], []>} : vector<8x4xf32>, vector<4x256xf32>, vector<8x256xf32> -> vector<8x256xf32>
    %20 = arith.addf %11, %19 : vector<8x256xf32>
    %c15_i32 = arith.constant 15 : i32
    %21 = tpu.dynamic_rotate %1 by %c15_i32 dim 1 : vector<4x256xf32>, i32 -> vector<4x256xf32>
    %c2 = arith.constant 2 : index
    %c0_15 = arith.constant 0 : index
    %c0_16 = arith.constant 0 : index
    %22 = vector.load %arg2[%c2, %c0_15, %c0_16] : memref<9x1x256xf32, #tpu.memory_space<vmem>>, vector<1x1x256xf32>
    %23 = vector.shape_cast %22 : vector<1x1x256xf32> to vector<1x256xf32>
    %24 = vector.broadcast %23 : vector<1x256xf32> to vector<4x256xf32>
    %25 = arith.mulf %21, %24 : vector<4x256xf32>
    %c2_17 = arith.constant 2 : index
    %c0_18 = arith.constant 0 : index
    %c0_19 = arith.constant 0 : index
    %26 = vector.load %arg3[%c2_17, %c0_18, %c0_19] : memref<9x8x4xf32, #tpu.memory_space<vmem>>, vector<1x8x4xf32>
    %27 = vector.shape_cast %26 : vector<1x8x4xf32> to vector<8x4xf32>
    %cst_20 = arith.constant dense<0.000000e+00> : vector<8x256xf32>
    %28 = tpu.matmul %27, %25, %cst_20 {dimension_numbers = #tpu.dot_dimension_numbers<[1], [0], [0], [1], [0, 0, 1, 1], [], []>} : vector<8x4xf32>, vector<4x256xf32>, vector<8x256xf32> -> vector<8x256xf32>
    %29 = arith.addf %20, %28 : vector<8x256xf32>
    %c1_i32 = arith.constant 1 : i32
    %30 = tpu.dynamic_rotate %1 by %c1_i32 dim 1 : vector<4x256xf32>, i32 -> vector<4x256xf32>
    %c3 = arith.constant 3 : index
    %c0_21 = arith.constant 0 : index
    %c0_22 = arith.constant 0 : index
    %31 = vector.load %arg2[%c3, %c0_21, %c0_22] : memref<9x1x256xf32, #tpu.memory_space<vmem>>, vector<1x1x256xf32>
    %32 = vector.shape_cast %31 : vector<1x1x256xf32> to vector<1x256xf32>
    %33 = vector.broadcast %32 : vector<1x256xf32> to vector<4x256xf32>
    %34 = arith.mulf %30, %33 : vector<4x256xf32>
    %c3_23 = arith.constant 3 : index
    %c0_24 = arith.constant 0 : index
    %c0_25 = arith.constant 0 : index
    %35 = vector.load %arg3[%c3_23, %c0_24, %c0_25] : memref<9x8x4xf32, #tpu.memory_space<vmem>>, vector<1x8x4xf32>
    %36 = vector.shape_cast %35 : vector<1x8x4xf32> to vector<8x4xf32>
    %cst_26 = arith.constant dense<0.000000e+00> : vector<8x256xf32>
    %37 = tpu.matmul %36, %34, %cst_26 {dimension_numbers = #tpu.dot_dimension_numbers<[1], [0], [0], [1], [0, 0, 1, 1], [], []>} : vector<8x4xf32>, vector<4x256xf32>, vector<8x256xf32> -> vector<8x256xf32>
    %38 = arith.addf %29, %37 : vector<8x256xf32>
    %c4 = arith.constant 4 : index
    %c0_27 = arith.constant 0 : index
    %c0_28 = arith.constant 0 : index
    %39 = vector.load %arg3[%c4, %c0_27, %c0_28] : memref<9x8x4xf32, #tpu.memory_space<vmem>>, vector<1x8x4xf32>
    %40 = vector.shape_cast %39 : vector<1x8x4xf32> to vector<8x4xf32>
    %cst_29 = arith.constant dense<0.000000e+00> : vector<8x256xf32>
    %41 = tpu.matmul %40, %1, %cst_29 {dimension_numbers = #tpu.dot_dimension_numbers<[1], [0], [0], [1], [0, 0, 1, 1], [], []>} : vector<8x4xf32>, vector<4x256xf32>, vector<8x256xf32> -> vector<8x256xf32>
    %42 = arith.addf %38, %41 : vector<8x256xf32>
    %c255_i32 = arith.constant 255 : i32
    %43 = tpu.dynamic_rotate %1 by %c255_i32 dim 1 : vector<4x256xf32>, i32 -> vector<4x256xf32>
    %c5 = arith.constant 5 : index
    %c0_30 = arith.constant 0 : index
    %c0_31 = arith.constant 0 : index
    %44 = vector.load %arg2[%c5, %c0_30, %c0_31] : memref<9x1x256xf32, #tpu.memory_space<vmem>>, vector<1x1x256xf32>
    %45 = vector.shape_cast %44 : vector<1x1x256xf32> to vector<1x256xf32>
    %46 = vector.broadcast %45 : vector<1x256xf32> to vector<4x256xf32>
    %47 = arith.mulf %43, %46 : vector<4x256xf32>
    %c5_32 = arith.constant 5 : index
    %c0_33 = arith.constant 0 : index
    %c0_34 = arith.constant 0 : index
    %48 = vector.load %arg3[%c5_32, %c0_33, %c0_34] : memref<9x8x4xf32, #tpu.memory_space<vmem>>, vector<1x8x4xf32>
    %49 = vector.shape_cast %48 : vector<1x8x4xf32> to vector<8x4xf32>
    %cst_35 = arith.constant dense<0.000000e+00> : vector<8x256xf32>
    %50 = tpu.matmul %49, %47, %cst_35 {dimension_numbers = #tpu.dot_dimension_numbers<[1], [0], [0], [1], [0, 0, 1, 1], [], []>} : vector<8x4xf32>, vector<4x256xf32>, vector<8x256xf32> -> vector<8x256xf32>
    %51 = arith.addf %42, %50 : vector<8x256xf32>
    %c241_i32 = arith.constant 241 : i32
    %52 = tpu.dynamic_rotate %1 by %c241_i32 dim 1 : vector<4x256xf32>, i32 -> vector<4x256xf32>
    %c6 = arith.constant 6 : index
    %c0_36 = arith.constant 0 : index
    %c0_37 = arith.constant 0 : index
    %53 = vector.load %arg2[%c6, %c0_36, %c0_37] : memref<9x1x256xf32, #tpu.memory_space<vmem>>, vector<1x1x256xf32>
    %54 = vector.shape_cast %53 : vector<1x1x256xf32> to vector<1x256xf32>
    %55 = vector.broadcast %54 : vector<1x256xf32> to vector<4x256xf32>
    %56 = arith.mulf %52, %55 : vector<4x256xf32>
    %c6_38 = arith.constant 6 : index
    %c0_39 = arith.constant 0 : index
    %c0_40 = arith.constant 0 : index
    %57 = vector.load %arg3[%c6_38, %c0_39, %c0_40] : memref<9x8x4xf32, #tpu.memory_space<vmem>>, vector<1x8x4xf32>
    %58 = vector.shape_cast %57 : vector<1x8x4xf32> to vector<8x4xf32>
    %cst_41 = arith.constant dense<0.000000e+00> : vector<8x256xf32>
    %59 = tpu.matmul %58, %56, %cst_41 {dimension_numbers = #tpu.dot_dimension_numbers<[1], [0], [0], [1], [0, 0, 1, 1], [], []>} : vector<8x4xf32>, vector<4x256xf32>, vector<8x256xf32> -> vector<8x256xf32>
    %60 = arith.addf %51, %59 : vector<8x256xf32>
    %c240_i32 = arith.constant 240 : i32
    %61 = tpu.dynamic_rotate %1 by %c240_i32 dim 1 : vector<4x256xf32>, i32 -> vector<4x256xf32>
    %c7 = arith.constant 7 : index
    %c0_42 = arith.constant 0 : index
    %c0_43 = arith.constant 0 : index
    %62 = vector.load %arg2[%c7, %c0_42, %c0_43] : memref<9x1x256xf32, #tpu.memory_space<vmem>>, vector<1x1x256xf32>
    %63 = vector.shape_cast %62 : vector<1x1x256xf32> to vector<1x256xf32>
    %64 = vector.broadcast %63 : vector<1x256xf32> to vector<4x256xf32>
    %65 = arith.mulf %61, %64 : vector<4x256xf32>
    %c7_44 = arith.constant 7 : index
    %c0_45 = arith.constant 0 : index
    %c0_46 = arith.constant 0 : index
    %66 = vector.load %arg3[%c7_44, %c0_45, %c0_46] : memref<9x8x4xf32, #tpu.memory_space<vmem>>, vector<1x8x4xf32>
    %67 = vector.shape_cast %66 : vector<1x8x4xf32> to vector<8x4xf32>
    %cst_47 = arith.constant dense<0.000000e+00> : vector<8x256xf32>
    %68 = tpu.matmul %67, %65, %cst_47 {dimension_numbers = #tpu.dot_dimension_numbers<[1], [0], [0], [1], [0, 0, 1, 1], [], []>} : vector<8x4xf32>, vector<4x256xf32>, vector<8x256xf32> -> vector<8x256xf32>
    %69 = arith.addf %60, %68 : vector<8x256xf32>
    %c239_i32 = arith.constant 239 : i32
    %70 = tpu.dynamic_rotate %1 by %c239_i32 dim 1 : vector<4x256xf32>, i32 -> vector<4x256xf32>
    %c8 = arith.constant 8 : index
    %c0_48 = arith.constant 0 : index
    %c0_49 = arith.constant 0 : index
    %71 = vector.load %arg2[%c8, %c0_48, %c0_49] : memref<9x1x256xf32, #tpu.memory_space<vmem>>, vector<1x1x256xf32>
    %72 = vector.shape_cast %71 : vector<1x1x256xf32> to vector<1x256xf32>
    %73 = vector.broadcast %72 : vector<1x256xf32> to vector<4x256xf32>
    %74 = arith.mulf %70, %73 : vector<4x256xf32>
    %c8_50 = arith.constant 8 : index
    %c0_51 = arith.constant 0 : index
    %c0_52 = arith.constant 0 : index
    %75 = vector.load %arg3[%c8_50, %c0_51, %c0_52] : memref<9x8x4xf32, #tpu.memory_space<vmem>>, vector<1x8x4xf32>
    %76 = vector.shape_cast %75 : vector<1x8x4xf32> to vector<8x4xf32>
    %cst_53 = arith.constant dense<0.000000e+00> : vector<8x256xf32>
    %77 = tpu.matmul %76, %74, %cst_53 {dimension_numbers = #tpu.dot_dimension_numbers<[1], [0], [0], [1], [0, 0, 1, 1], [], []>} : vector<8x4xf32>, vector<4x256xf32>, vector<8x256xf32> -> vector<8x256xf32>
    %78 = arith.addf %69, %77 : vector<8x256xf32>
    %c0_54 = arith.constant 0 : index
    %c0_55 = arith.constant 0 : index
    %79 = vector.load %arg4[%c0_54, %c0_55] : memref<8x1xf32, #tpu.memory_space<vmem>>, vector<8x1xf32>
    %80 = vector.broadcast %79 : vector<8x1xf32> to vector<8x256xf32>
    %81 = arith.addf %78, %80 : vector<8x256xf32>
    %cst_56 = arith.constant 0.000000e+00 : f32
    %82 = vector.broadcast %cst_56 : f32 to vector<8x256xf32>
    %83 = arith.maximumf %81, %82 : vector<8x256xf32>
    %cst_57 = arith.constant 0.000000e+00 : f32
    %84 = vector.broadcast %cst_57 : f32 to vector<16x256xf32>
    %c17_i32_58 = arith.constant 17 : i32
    %85 = tpu.dynamic_rotate %83 by %c17_i32_58 dim 1 : vector<8x256xf32>, i32 -> vector<8x256xf32>
    %c0_59 = arith.constant 0 : index
    %c0_60 = arith.constant 0 : index
    %c0_61 = arith.constant 0 : index
    %86 = vector.load %arg2[%c0_59, %c0_60, %c0_61] : memref<9x1x256xf32, #tpu.memory_space<vmem>>, vector<1x1x256xf32>
    %87 = vector.shape_cast %86 : vector<1x1x256xf32> to vector<1x256xf32>
    %88 = vector.broadcast %87 : vector<1x256xf32> to vector<8x256xf32>
    %89 = arith.mulf %85, %88 : vector<8x256xf32>
    %c0_62 = arith.constant 0 : index
    %c0_63 = arith.constant 0 : index
    %c0_64 = arith.constant 0 : index
    %90 = vector.load %arg5[%c0_62, %c0_63, %c0_64] : memref<9x16x8xf32, #tpu.memory_space<vmem>>, vector<1x16x8xf32>
    %91 = vector.shape_cast %90 : vector<1x16x8xf32> to vector<16x8xf32>
    %cst_65 = arith.constant dense<0.000000e+00> : vector<16x256xf32>
    %92 = tpu.matmul %91, %89, %cst_65 {dimension_numbers = #tpu.dot_dimension_numbers<[1], [0], [0], [1], [0, 0, 1, 1], [], []>} : vector<16x8xf32>, vector<8x256xf32>, vector<16x256xf32> -> vector<16x256xf32>
    %93 = arith.addf %84, %92 : vector<16x256xf32>
    %c16_i32_66 = arith.constant 16 : i32
    %94 = tpu.dynamic_rotate %83 by %c16_i32_66 dim 1 : vector<8x256xf32>, i32 -> vector<8x256xf32>
    %c1_67 = arith.constant 1 : index
    %c0_68 = arith.constant 0 : index
    %c0_69 = arith.constant 0 : index
    %95 = vector.load %arg2[%c1_67, %c0_68, %c0_69] : memref<9x1x256xf32, #tpu.memory_space<vmem>>, vector<1x1x256xf32>
    %96 = vector.shape_cast %95 : vector<1x1x256xf32> to vector<1x256xf32>
    %97 = vector.broadcast %96 : vector<1x256xf32> to vector<8x256xf32>
    %98 = arith.mulf %94, %97 : vector<8x256xf32>
    %c1_70 = arith.constant 1 : index
    %c0_71 = arith.constant 0 : index
    %c0_72 = arith.constant 0 : index
    %99 = vector.load %arg5[%c1_70, %c0_71, %c0_72] : memref<9x16x8xf32, #tpu.memory_space<vmem>>, vector<1x16x8xf32>
    %100 = vector.shape_cast %99 : vector<1x16x8xf32> to vector<16x8xf32>
    %cst_73 = arith.constant dense<0.000000e+00> : vector<16x256xf32>
    %101 = tpu.matmul %100, %98, %cst_73 {dimension_numbers = #tpu.dot_dimension_numbers<[1], [0], [0], [1], [0, 0, 1, 1], [], []>} : vector<16x8xf32>, vector<8x256xf32>, vector<16x256xf32> -> vector<16x256xf32>
    %102 = arith.addf %93, %101 : vector<16x256xf32>
    %c15_i32_74 = arith.constant 15 : i32
    %103 = tpu.dynamic_rotate %83 by %c15_i32_74 dim 1 : vector<8x256xf32>, i32 -> vector<8x256xf32>
    %c2_75 = arith.constant 2 : index
    %c0_76 = arith.constant 0 : index
    %c0_77 = arith.constant 0 : index
    %104 = vector.load %arg2[%c2_75, %c0_76, %c0_77] : memref<9x1x256xf32, #tpu.memory_space<vmem>>, vector<1x1x256xf32>
    %105 = vector.shape_cast %104 : vector<1x1x256xf32> to vector<1x256xf32>
    %106 = vector.broadcast %105 : vector<1x256xf32> to vector<8x256xf32>
    %107 = arith.mulf %103, %106 : vector<8x256xf32>
    %c2_78 = arith.constant 2 : index
    %c0_79 = arith.constant 0 : index
    %c0_80 = arith.constant 0 : index
    %108 = vector.load %arg5[%c2_78, %c0_79, %c0_80] : memref<9x16x8xf32, #tpu.memory_space<vmem>>, vector<1x16x8xf32>
    %109 = vector.shape_cast %108 : vector<1x16x8xf32> to vector<16x8xf32>
    %cst_81 = arith.constant dense<0.000000e+00> : vector<16x256xf32>
    %110 = tpu.matmul %109, %107, %cst_81 {dimension_numbers = #tpu.dot_dimension_numbers<[1], [0], [0], [1], [0, 0, 1, 1], [], []>} : vector<16x8xf32>, vector<8x256xf32>, vector<16x256xf32> -> vector<16x256xf32>
    %111 = arith.addf %102, %110 : vector<16x256xf32>
    %c1_i32_82 = arith.constant 1 : i32
    %112 = tpu.dynamic_rotate %83 by %c1_i32_82 dim 1 : vector<8x256xf32>, i32 -> vector<8x256xf32>
    %c3_83 = arith.constant 3 : index
    %c0_84 = arith.constant 0 : index
    %c0_85 = arith.constant 0 : index
    %113 = vector.load %arg2[%c3_83, %c0_84, %c0_85] : memref<9x1x256xf32, #tpu.memory_space<vmem>>, vector<1x1x256xf32>
    %114 = vector.shape_cast %113 : vector<1x1x256xf32> to vector<1x256xf32>
    %115 = vector.broadcast %114 : vector<1x256xf32> to vector<8x256xf32>
    %116 = arith.mulf %112, %115 : vector<8x256xf32>
    %c3_86 = arith.constant 3 : index
    %c0_87 = arith.constant 0 : index
    %c0_88 = arith.constant 0 : index
    %117 = vector.load %arg5[%c3_86, %c0_87, %c0_88] : memref<9x16x8xf32, #tpu.memory_space<vmem>>, vector<1x16x8xf32>
    %118 = vector.shape_cast %117 : vector<1x16x8xf32> to vector<16x8xf32>
    %cst_89 = arith.constant dense<0.000000e+00> : vector<16x256xf32>
    %119 = tpu.matmul %118, %116, %cst_89 {dimension_numbers = #tpu.dot_dimension_numbers<[1], [0], [0], [1], [0, 0, 1, 1], [], []>} : vector<16x8xf32>, vector<8x256xf32>, vector<16x256xf32> -> vector<16x256xf32>
    %120 = arith.addf %111, %119 : vector<16x256xf32>
    %c4_90 = arith.constant 4 : index
    %c0_91 = arith.constant 0 : index
    %c0_92 = arith.constant 0 : index
    %121 = vector.load %arg5[%c4_90, %c0_91, %c0_92] : memref<9x16x8xf32, #tpu.memory_space<vmem>>, vector<1x16x8xf32>
    %122 = vector.shape_cast %121 : vector<1x16x8xf32> to vector<16x8xf32>
    %cst_93 = arith.constant dense<0.000000e+00> : vector<16x256xf32>
    %123 = tpu.matmul %122, %83, %cst_93 {dimension_numbers = #tpu.dot_dimension_numbers<[1], [0], [0], [1], [0, 0, 1, 1], [], []>} : vector<16x8xf32>, vector<8x256xf32>, vector<16x256xf32> -> vector<16x256xf32>
    %124 = arith.addf %120, %123 : vector<16x256xf32>
    %c255_i32_94 = arith.constant 255 : i32
    %125 = tpu.dynamic_rotate %83 by %c255_i32_94 dim 1 : vector<8x256xf32>, i32 -> vector<8x256xf32>
    %c5_95 = arith.constant 5 : index
    %c0_96 = arith.constant 0 : index
    %c0_97 = arith.constant 0 : index
    %126 = vector.load %arg2[%c5_95, %c0_96, %c0_97] : memref<9x1x256xf32, #tpu.memory_space<vmem>>, vector<1x1x256xf32>
    %127 = vector.shape_cast %126 : vector<1x1x256xf32> to vector<1x256xf32>
    %128 = vector.broadcast %127 : vector<1x256xf32> to vector<8x256xf32>
    %129 = arith.mulf %125, %128 : vector<8x256xf32>
    %c5_98 = arith.constant 5 : index
    %c0_99 = arith.constant 0 : index
    %c0_100 = arith.constant 0 : index
    %130 = vector.load %arg5[%c5_98, %c0_99, %c0_100] : memref<9x16x8xf32, #tpu.memory_space<vmem>>, vector<1x16x8xf32>
    %131 = vector.shape_cast %130 : vector<1x16x8xf32> to vector<16x8xf32>
    %cst_101 = arith.constant dense<0.000000e+00> : vector<16x256xf32>
    %132 = tpu.matmul %131, %129, %cst_101 {dimension_numbers = #tpu.dot_dimension_numbers<[1], [0], [0], [1], [0, 0, 1, 1], [], []>} : vector<16x8xf32>, vector<8x256xf32>, vector<16x256xf32> -> vector<16x256xf32>
    %133 = arith.addf %124, %132 : vector<16x256xf32>
    %c241_i32_102 = arith.constant 241 : i32
    %134 = tpu.dynamic_rotate %83 by %c241_i32_102 dim 1 : vector<8x256xf32>, i32 -> vector<8x256xf32>
    %c6_103 = arith.constant 6 : index
    %c0_104 = arith.constant 0 : index
    %c0_105 = arith.constant 0 : index
    %135 = vector.load %arg2[%c6_103, %c0_104, %c0_105] : memref<9x1x256xf32, #tpu.memory_space<vmem>>, vector<1x1x256xf32>
    %136 = vector.shape_cast %135 : vector<1x1x256xf32> to vector<1x256xf32>
    %137 = vector.broadcast %136 : vector<1x256xf32> to vector<8x256xf32>
    %138 = arith.mulf %134, %137 : vector<8x256xf32>
    %c6_106 = arith.constant 6 : index
    %c0_107 = arith.constant 0 : index
    %c0_108 = arith.constant 0 : index
    %139 = vector.load %arg5[%c6_106, %c0_107, %c0_108] : memref<9x16x8xf32, #tpu.memory_space<vmem>>, vector<1x16x8xf32>
    %140 = vector.shape_cast %139 : vector<1x16x8xf32> to vector<16x8xf32>
    %cst_109 = arith.constant dense<0.000000e+00> : vector<16x256xf32>
    %141 = tpu.matmul %140, %138, %cst_109 {dimension_numbers = #tpu.dot_dimension_numbers<[1], [0], [0], [1], [0, 0, 1, 1], [], []>} : vector<16x8xf32>, vector<8x256xf32>, vector<16x256xf32> -> vector<16x256xf32>
    %142 = arith.addf %133, %141 : vector<16x256xf32>
    %c240_i32_110 = arith.constant 240 : i32
    %143 = tpu.dynamic_rotate %83 by %c240_i32_110 dim 1 : vector<8x256xf32>, i32 -> vector<8x256xf32>
    %c7_111 = arith.constant 7 : index
    %c0_112 = arith.constant 0 : index
    %c0_113 = arith.constant 0 : index
    %144 = vector.load %arg2[%c7_111, %c0_112, %c0_113] : memref<9x1x256xf32, #tpu.memory_space<vmem>>, vector<1x1x256xf32>
    %145 = vector.shape_cast %144 : vector<1x1x256xf32> to vector<1x256xf32>
    %146 = vector.broadcast %145 : vector<1x256xf32> to vector<8x256xf32>
    %147 = arith.mulf %143, %146 : vector<8x256xf32>
    %c7_114 = arith.constant 7 : index
    %c0_115 = arith.constant 0 : index
    %c0_116 = arith.constant 0 : index
    %148 = vector.load %arg5[%c7_114, %c0_115, %c0_116] : memref<9x16x8xf32, #tpu.memory_space<vmem>>, vector<1x16x8xf32>
    %149 = vector.shape_cast %148 : vector<1x16x8xf32> to vector<16x8xf32>
    %cst_117 = arith.constant dense<0.000000e+00> : vector<16x256xf32>
    %150 = tpu.matmul %149, %147, %cst_117 {dimension_numbers = #tpu.dot_dimension_numbers<[1], [0], [0], [1], [0, 0, 1, 1], [], []>} : vector<16x8xf32>, vector<8x256xf32>, vector<16x256xf32> -> vector<16x256xf32>
    %151 = arith.addf %142, %150 : vector<16x256xf32>
    %c239_i32_118 = arith.constant 239 : i32
    %152 = tpu.dynamic_rotate %83 by %c239_i32_118 dim 1 : vector<8x256xf32>, i32 -> vector<8x256xf32>
    %c8_119 = arith.constant 8 : index
    %c0_120 = arith.constant 0 : index
    %c0_121 = arith.constant 0 : index
    %153 = vector.load %arg2[%c8_119, %c0_120, %c0_121] : memref<9x1x256xf32, #tpu.memory_space<vmem>>, vector<1x1x256xf32>
    %154 = vector.shape_cast %153 : vector<1x1x256xf32> to vector<1x256xf32>
    %155 = vector.broadcast %154 : vector<1x256xf32> to vector<8x256xf32>
    %156 = arith.mulf %152, %155 : vector<8x256xf32>
    %c8_122 = arith.constant 8 : index
    %c0_123 = arith.constant 0 : index
    %c0_124 = arith.constant 0 : index
    %157 = vector.load %arg5[%c8_122, %c0_123, %c0_124] : memref<9x16x8xf32, #tpu.memory_space<vmem>>, vector<1x16x8xf32>
    %158 = vector.shape_cast %157 : vector<1x16x8xf32> to vector<16x8xf32>
    %cst_125 = arith.constant dense<0.000000e+00> : vector<16x256xf32>
    %159 = tpu.matmul %158, %156, %cst_125 {dimension_numbers = #tpu.dot_dimension_numbers<[1], [0], [0], [1], [0, 0, 1, 1], [], []>} : vector<16x8xf32>, vector<8x256xf32>, vector<16x256xf32> -> vector<16x256xf32>
    %160 = arith.addf %151, %159 : vector<16x256xf32>
    %c0_126 = arith.constant 0 : index
    %c0_127 = arith.constant 0 : index
    %161 = vector.load %arg6[%c0_126, %c0_127] : memref<16x1xf32, #tpu.memory_space<vmem>>, vector<16x1xf32>
    %162 = vector.broadcast %161 : vector<16x1xf32> to vector<16x256xf32>
    %163 = arith.addf %160, %162 : vector<16x256xf32>
    %cst_128 = arith.constant 0.000000e+00 : f32
    %164 = vector.broadcast %cst_128 : f32 to vector<16x256xf32>
    %165 = arith.maximumf %163, %164 : vector<16x256xf32>
    %c0_129 = arith.constant 0 : index
    %c0_130 = arith.constant 0 : index
    %c0_131 = arith.constant 0 : index
    %166 = vector.load %arg7[%c0_129, %c0_130, %c0_131] : memref<1x16x256xf32, #tpu.memory_space<vmem>>, vector<1x16x256xf32>
    %167 = vector.shape_cast %166 : vector<1x16x256xf32> to vector<16x256xf32>
    %168 = vector.shape_cast %165 : vector<16x256xf32> to vector<1x16x256xf32>
    tpu.vector_store %arg7[%c0_129, %c0_130, %c0_131], %168 {strides = array<i32>} : memref<1x16x256xf32, #tpu.memory_space<vmem>>, vector<1x16x256xf32>,
    return
  }
  func.func @transform_0(%arg0: i32) -> (i32, i32, i32) {
    %c0_i32 = arith.constant 0 : i32
    %c0_i32_0 = arith.constant 0 : i32
    %c0_i32_1 = arith.constant 0 : i32
    return %arg0, %c0_i32, %c0_i32_0 : i32, i32, i32
  }
  func.func @transform_1(%arg0: i32) -> (i32, i32, i32) {
    %c0_i32 = arith.constant 0 : i32
    %c0_i32_0 = arith.constant 0 : i32
    %c0_i32_1 = arith.constant 0 : i32
    %c0_i32_2 = arith.constant 0 : i32
    return %c0_i32, %c0_i32_0, %c0_i32_1 : i32, i32, i32
  }
  func.func @transform_2(%arg0: i32) -> (i32, i32, i32) {
    %c0_i32 = arith.constant 0 : i32
    %c0_i32_0 = arith.constant 0 : i32
    %c0_i32_1 = arith.constant 0 : i32
    %c0_i32_2 = arith.constant 0 : i32
    return %c0_i32, %c0_i32_0, %c0_i32_1 : i32, i32, i32
  }
  func.func @transform_3(%arg0: i32) -> (i32, i32) {
    %c0_i32 = arith.constant 0 : i32
    %c0_i32_0 = arith.constant 0 : i32
    %c0_i32_1 = arith.constant 0 : i32
    return %c0_i32, %c0_i32_0 : i32, i32
  }
  func.func @transform_4(%arg0: i32) -> (i32, i32, i32) {
    %c0_i32 = arith.constant 0 : i32
    %c0_i32_0 = arith.constant 0 : i32
    %c0_i32_1 = arith.constant 0 : i32
    %c0_i32_2 = arith.constant 0 : i32
    return %c0_i32, %c0_i32_0, %c0_i32_1 : i32, i32, i32
  }
  func.func @transform_5(%arg0: i32) -> (i32, i32) {
    %c0_i32 = arith.constant 0 : i32
    %c0_i32_0 = arith.constant 0 : i32
    %c0_i32_1 = arith.constant 0 : i32
    return %c0_i32, %c0_i32_0 : i32, i32
  }
  func.func @transform_6(%arg0: i32) -> (i32, i32, i32) {
    %c0_i32 = arith.constant 0 : i32
    %c0_i32_0 = arith.constant 0 : i32
    %c0_i32_1 = arith.constant 0 : i32
    return %arg0, %c0_i32, %c0_i32_0 : i32, i32, i32
  }
}

</mosaic_0001>

<bundles_post_ra>
// kernel: forward.1
= control target key start
LH: loop header
LB: loop body
LE: loop exit
PB: predicated region body
PF: predicated region fallthrough
CT: control target
= control target key end

     0   :  { %s2302_s21 = smov 0   ;;  %s2745_s0 = inlined_call_operand.vmem [shape: f32[2,4,256], index: 0, kind: input, shape index: {}]   ;;  %s2746_s1 = inlined_call_operand.vmem [shape: f32[9,1,256], index: 1, kind: input, shape index: {}]   ;;  %s2747_s2 = inlined_call_operand.vmem [shape: f32[9,8,4], index: 2, kind: input, shape index: {}]   ;;  %s2748_s3 = inlined_call_operand.vmem [shape: f32[8,1], index: 3, kind: input, shape index: {}]   ;;  %s2749_s4 = inlined_call_operand.vmem [shape: f32[9,16,8], index: 4, kind: input, shape index: {}]   ;;  %s2750_s5 = inlined_call_operand.vmem [shape: f32[16,1], index: 5, kind: input, shape index: {}]   ;;  %s2751_s6 = inlined_call_operand.vmem [shape: f32[2,16,256], index: 6, kind: output, shape index: {}]  }
   0x1 LB: > { %s2139_s22 = sadd.s32 4294967295, %s2255_s21   ;;  %p2143_p0 = scmp.ge.s32.totalorder %s2255_s21, 1  ;;  %s2255_s21 = sphi %s2302_s21, %s16_s21  }
   0x2   : > { %p212_p1 = scmp.lt.s32.totalorder %s2255_s21, 3 }
   0x4   : > { %p213_p2 = pnand %p2143_p0, %p212_p1 }
   0x5   : > { %p242_p3 = scmp.lt.s32.totalorder (!%p213_p2), %s2139_s22, 1  ;;  %s2258_s27 = smov (!%p213_p2), 17  }
   0x6   : > { %216 = sbr.rel (%p213_p2) target bundleno = 724 (0x2d4), region = 44  ;;  %s2259_s28 = smov (!%p213_p2), 16  }
   0x7   : > { %s2260_s29 = smov (!%p213_p2), 15   ;;  %s2261_s30 = smov (!%p213_p2), 1  }
   0x8   : > { %s2262_s7 = smov (!%p213_p2), 127   ;;  %s2263_s8 = smov (!%p213_p2), 113  }
   0x9   : > { %s2265_s9 = smov (!%p213_p2), 112   ;;  %s2266_s10 = smov (!%p213_p2), 111  }
   0xb   : > { %s2753_s22 = smov (!%p242_p3, %s2139_s22), 1  ;;  %v2257_v1 = vmov 0.0   ;;  %v2264_v3 = vmov 0   ;;  %v1184_v4 = vld [vmem:[%s2748_s3] sm:$0xff]  ;;  %v260_v5 = vlaneseq  ;;  %vm308_vm1 = vcmask 1043456   ;;  %v2149_v40 = vld [vmem:[%s2747_s2 + $0x8] sm:$0xff] }
   0xc   : > { %s2226_s23 = sshll.u32 %s2753_s22, 3  ;;  %379 = vmatprep.mubr.f32.mxu0 %v2257_v1  ;;  %459 = vmatprep.mubr.f32.mxu1 %v2257_v1  ;;  %v265_v10 = vld [vmem:[%s2746_s1] sm:$0x3]  ;;  %v2148_v15 = vld [vmem:[%s2746_s1 + $0x2] sm:$0x3]  ;;  %vm304_vm5 = vcmask 31744  }
   0xd   : > { %s246_s26 = scalar_lea.vmem %s2745_s0, %s2226_s23  ;;  %2246 = vset.pattern.permute.xlu0 %v2264_v3  ;;  %2247 = vset.pattern.permute.xlu1 %v2264_v3  ;;  %v268_v6 = vshrl.u32 %v260_v5, 7  ;;  %v2359_v7 = vand.u32 127, %v260_v5  ;;  %v2156_v20 = vld [vmem:[%s2746_s1 + $0x4] sm:$0x3]  ;;  %v2161_v25 = vld [vmem:[%s2746_s1 + $0x6] sm:$0x3] }
   0xe   : > { %v2316_v0 = vld [vmem:[%s246_s26] sm:$0xff]  ;;  %v2170_v39 = vld [vmem:[%s2746_s1 + $0xa] sm:$0x3]  ;;  %v2175_v51 = vld [vmem:[%s2746_s1 + $0xc] sm:$0x3]  ;;  %vm1215_vm10 = vcmask 64512  }
   0xf   : > { %256 = vrot.lane.b32.xlu1 %v2316_v0, %s2258_s27  ;;  %280 = vrot.lane.b32.xlu0 %v2316_v0, %s2259_s28  ;;  %v2325_v2 = vcombine.high %v2316_v0, %v2316_v0  ;;  %v2361_v8 = vsub.s32 0, %v268_v6  ;;  %v2363_v9 = vsub.s32 1, %v268_v6  ;;  %vm262_vm0 = vcmp.lt.s32.totalorder %v2359_v7, 17  ;;  %v279_v26 = vld [vmem:[%s2747_s2] sm:$0xff]  ;;  %v2157_v52 = vld [vmem:[%s2747_s2 + $0x10] sm:$0xff]  ;;  %s2227_s15 = sshll.u32 %s2753_s22, 5 }
  0x10   : > { %vm470_vm2 = vcmp.lt.s32.totalorder %v2359_v7, 15  ;;  %vm284_vm3 = vcmp.lt.s32.totalorder %v2359_v7, 16  ;;  %vm576_vm4 = vcmp.lt.s32.totalorder %v2359_v7, 1  ;;  %vm764_vm6 = vcmp.lt.s32.totalorder %v2359_v7, 127  ;;  %v2162_v53 = vld [vmem:[%s2747_s2 + $0x18] sm:$0xff]  ;;  %v2166_v63 = vld [vmem:[%s2747_s2 + $0x20] sm:$0xff]  ;;  %s251_s18 = scalar_lea.vmem %s2751_s6, %s2227_s15 }
  0x11   : > { %v2370_v13 = vrot.slane %v265_v10, %v2361_v8  ;;  %v2373_v14 = vrot.slane %v265_v10, %v2363_v9  ;;  %v2390_v23 = vrot.slane %v2148_v15, %v2361_v8  ;;  %v2393_v24 = vrot.slane %v2148_v15, %v2363_v9  ;;  %v2180_v62 = vld [vmem:[%s2746_s1 + $0xe] sm:$0x3]  ;;  %v2176_v15 = vld [vmem:[%s2747_s2 + $0x30] sm:$0xff] }
  0x12   : > { %v2403_v27 = vrot.slane %v2156_v20, %v2361_v8  ;;  %v2406_v28 = vrot.slane %v2156_v20, %v2363_v9  ;;  %v2417_v34 = vrot.slane %v2161_v25, %v2361_v8  ;;  %v2424_v38 = vrot.slane %v2161_v25, %v2363_v9 }
  0x13   : > { %466 = vrot.lane.b32.xlu0 %v2316_v0, %s2260_s29  ;;  %258 = vrot.lane.b32.xlu1 %v2325_v2, %s2258_s27  ;;  %v2443_v47 = vrot.slane %v2170_v39, %v2361_v8  ;;  %v2451_v50 = vrot.slane %v2170_v39, %v2363_v9  ;;  %v2473_v58 = vrot.slane %v2175_v51, %v2361_v8  ;;  %vm870_vm7 = vcmp.lt.s32.totalorder %v2359_v7, 113 }
  0x14   : > { %v2481_v61 = vrot.slane %v2175_v51, %v2363_v9  ;;  %v2503_v6 = vrot.slane %v2180_v62, %v2361_v8  ;;  %vm976_vm8 = vcmp.lt.s32.totalorder %v2359_v7, 112  ;;  %vm1082_vm9 = vcmp.lt.s32.totalorder %v2359_v7, 111  ;;  %v2216_v7 = vld [vmem:[%s2749_s4 + $0x70] sm:$0xff] }
  0x17   : > { %468 = vrot.lane.b32.xlu1 %v2325_v2, %s2260_s29  ;;  %282 = vrot.lane.b32.xlu0 %v2325_v2, %s2259_s28 }
  0x1b   : > { %574 = vrot.lane.b32.xlu1 %v2325_v2, %s2261_s30  ;;  %572 = vrot.lane.b32.xlu0 %v2316_v0, %s2261_s30 }
  0x1f   : > { %762 = vrot.lane.b32.xlu1 %v2325_v2, %s2262_s7  ;;  %760 = vrot.lane.b32.xlu0 %v2316_v0, %s2262_s7 }
  0x23   : > { %868 = vrot.lane.b32.xlu1 %v2325_v2, %s2263_s8  ;;  %866 = vrot.lane.b32.xlu0 %v2316_v0, %s2263_s8 }
  0x27   : > { %974 = vrot.lane.b32.xlu1 %v2325_v2, %s2265_s9  ;;  %972 = vrot.lane.b32.xlu0 %v2316_v0, %s2265_s9 }
  0x2b   : > { %1080 = vrot.lane.b32.xlu1 %v2325_v2, %s2266_s10  ;;  %1078 = vrot.lane.b32.xlu0 %v2316_v0, %s2266_s10 }
  0x2f   : > { %1187 = vperm.xlu0 %2246, %v1184_v4  }
  0x81   : > { %v257_v11 = vpop.permute.xlu1 %256  ;;  %v281_v12 = vpop.permute.xlu0 %280 }
  0x85   : > { %v467_v16 = vpop.permute.xlu0 %466  ;;  %v259_v17 = vpop.permute.xlu1 %258 }
  0x86   : > { %v263_v18 = vsel %vm262_vm0, %v257_v11, %v259_v17  ;;  %v264_v19 = vsel %vm262_vm0, %v259_v17, %v257_v11 }
  0x87   : > { %v277_v21 = vmul.f32 %v2370_v13, %v264_v19  ;;  %v278_v22 = vmul.f32 %v2373_v14, %v263_v18 }
  0x89   : > { %2153 = vmatprep.subr.msk.mxu1 %vm308_vm1, %v278_v22  ;;  %v469_v29 = vpop.permute.xlu1 %468  ;;  %v283_v30 = vpop.permute.xlu0 %282 }
  0x8a   : > { %v471_v31 = vsel %vm470_vm2, %v467_v16, %v469_v29  ;;  %v285_v32 = vsel %vm284_vm3, %v281_v12, %v283_v30  ;;  %v286_v33 = vsel %vm284_vm3, %v283_v30, %v281_v12  ;;  %2154 = vmatpush1.msk.msra.mxu1 %vm308_vm1, %v277_v21  ;;  %v472_v35 = vsel %vm470_vm2, %v469_v29, %v467_v16  ;;  %v2185_v16 = vld [vmem:[%s2746_s1 + $0x10] sm:$0x3]  ;;  %v2181_v29 = vld [vmem:[%s2747_s2 + $0x38] sm:$0xff] }
  0x8b   : > { %v300_v36 = vmul.f32 %v2390_v23, %v286_v33  ;;  %v301_v37 = vmul.f32 %v2393_v24, %v285_v32  ;;  %2155 = vmatmul.mubr.msk.f32.vlgmr.msra.gmra.mxu1 %vm304_vm5, %v279_v26  ;;  %v487_v41 = vmul.f32 %v2406_v28, %v471_v31  ;;  %v486_v44 = vmul.f32 %v2403_v27, %v472_v35  ;;  %v2186_v35 = vld [vmem:[%s2747_s2 + $0x40] sm:$0xff] }
  0x8c   : > { %669 = vmatprep.mubr.f32.mxu1 %v2257_v1  ;;  %v2511_v12 = vrot.slane %v2180_v62, %v2363_v9  ;;  %v2532_v25 = vrot.slane %v2185_v16, %v2361_v8  ;;  %v2535_v26 = vrot.slane %v2185_v16, %v2363_v9 }
  0x8d   : > { %v575_v42 = vpop.permute.xlu1 %574  ;;  %2150 = vmatprep.subr.msk.mxu0 %vm308_vm1, %v301_v37  ;;  %v573_v43 = vpop.permute.xlu0 %572 }
  0x8e   : > { %v577_v45 = vsel %vm576_vm4, %v573_v43, %v575_v42  ;;  %v578_v46 = vsel %vm576_vm4, %v575_v42, %v573_v43  ;;  %2151 = vmatpush1.msk.msra.mxu0 %vm308_vm1, %v300_v36 }
  0x8f   : > { %v592_v48 = vmul.f32 %v2417_v34, %v578_v46  ;;  %v593_v49 = vmul.f32 %v2424_v38, %v577_v45  ;;  %2152 = vmatmul.mubr.msk.f32.vlgmr.msra.gmra.mxu0 %vm304_vm5, %v2149_v40  ;;  %2158 = vmatprep.subr.msk.mxu0 %vm308_vm1, %v487_v41 }
  0x90   : > { %2159 = vmatpush1.msk.msra.mxu0 %vm308_vm1, %v486_v44  ;;  %563 = vmatprep.mubr.f32.mxu0 %v2257_v1 }
  0x91   : > { %v763_v54 = vpop.permute.xlu1 %762  ;;  %2163 = vmatprep.subr.msk.mxu1 %vm308_vm1, %v593_v49  ;;  %v761_v55 = vpop.permute.xlu0 %760  ;;  %2167 = vmatprep.subr.msk.mxu0 %vm308_vm1, %v2325_v2  ;;  %v2171_v2 = vld [vmem:[%s2747_s2 + $0x28] sm:$0xff] }
  0x92   : > { %v765_v56 = vsel %vm764_vm6, %v761_v55, %v763_v54  ;;  %v766_v57 = vsel %vm764_vm6, %v763_v54, %v761_v55  ;;  %2164 = vmatpush1.msk.msra.mxu1 %vm308_vm1, %v592_v48 }
  0x93   : > { %v780_v59 = vmul.f32 %v2443_v47, %v765_v56  ;;  %v781_v60 = vmul.f32 %v2451_v50, %v766_v57  ;;  %2160 = vmatmul.mubr.msk.f32.vlgmr.msra.gmra.mxu0 %vm304_vm5, %v2157_v52  ;;  %2165 = vmatmul.mubr.msk.f32.vlgmr.msra.gmra.mxu1 %vm304_vm5, %v2162_v53 }
  0x94   : > { %2168 = vmatpush1.msk.msra.mxu0 %vm308_vm1, %v2316_v0  ;;  %751 = vmatprep.mubr.f32.mxu0 %v2257_v1 }
  0x95   : > { %v869_v3 = vpop.permute.xlu1 %868  ;;  %2172 = vmatprep.subr.msk.mxu1 %vm308_vm1, %v781_v60  ;;  %v867_v4 = vpop.permute.xlu0 %866  ;;  %857 = vmatprep.mubr.f32.mxu1 %v2257_v1 }
  0x96   : > { %v871_v5 = vsel %vm870_vm7, %v867_v4, %v869_v3  ;;  %v872_v0 = vsel %vm870_vm7, %v869_v3, %v867_v4  ;;  %2173 = vmatpush1.msk.msra.mxu1 %vm308_vm1, %v780_v59 }
  0x97   : > { %v886_v10 = vmul.f32 %v2473_v58, %v871_v5  ;;  %v887_v11 = vmul.f32 %v2481_v61, %v872_v0  ;;  %2169 = vmatmul.mubr.msk.f32.vlgmr.msra.gmra.mxu0 %vm304_vm5, %v2166_v63  ;;  %2174 = vmatmul.mubr.msk.f32.vlgmr.msra.gmra.mxu1 %vm304_vm5, %v2171_v2 }
  0x98   : > { %963 = vmatprep.mubr.f32.mxu0 %v2257_v1  ;;  %1069 = vmatprep.mubr.f32.mxu1 %v2257_v1 }
  0x99   : > { %v975_v17 = vpop.permute.xlu1 %974  ;;  %2177 = vmatprep.subr.msk.mxu0 %vm308_vm1, %v887_v11  ;;  %v973_v18 = vpop.permute.xlu0 %972 }
  0x9a   : > { %v977_v19 = vsel %vm976_vm8, %v973_v18, %v975_v17  ;;  %v978_v20 = vsel %vm976_vm8, %v975_v17, %v973_v18  ;;  %2178 = vmatpush1.msk.msra.mxu0 %vm308_vm1, %v886_v10 }
  0x9b   : > { %v992_v21 = vmul.f32 %v2503_v6, %v977_v19  ;;  %v993_v22 = vmul.f32 %v2511_v12, %v978_v20  ;;  %2179 = vmatmul.mubr.msk.f32.vlgmr.msra.gmra.mxu0 %vm304_vm5, %v2176_v15 }
  0x9c   : > { %1175 = vmatprep.mubr.f32.mxu0 %v2257_v1 }
  0x9d   : > { %v1081_v30 = vpop.permute.xlu1 %1080  ;;  %2182 = vmatprep.subr.msk.mxu1 %vm308_vm1, %v993_v22  ;;  %v1079_v31 = vpop.permute.xlu0 %1078 }
  0x9e   : > { %v1083_v32 = vsel %vm1082_vm9, %v1079_v31, %v1081_v30  ;;  %v1084_v8 = vsel %vm1082_vm9, %v1081_v30, %v1079_v31  ;;  %2183 = vmatpush1.msk.msra.mxu1 %vm308_vm1, %v992_v21  ;;  %v2060_v30 = vld [vmem:[%s2750_s5] sm:$0xff]  ;;  %v2061_v31 = vld [vmem:[%s2750_s5 + $0x8] sm:$0xff] }
  0x9f   : > { %v1098_v9 = vmul.f32 %v2532_v25, %v1083_v32  ;;  %v1099_v33 = vmul.f32 %v2535_v26, %v1084_v8  ;;  %2184 = vmatmul.mubr.msk.f32.vlgmr.msra.gmra.mxu1 %vm304_vm5, %v2181_v29 }
  0xa0   : > { %1286 = vmatprep.mubr.f32.mxu1 %v2257_v1 }
  0xa1   : > { %2187 = vmatprep.subr.msk.mxu0 %vm308_vm1, %v1099_v33 }
  0xa2   : > { %2188 = vmatpush1.msk.msra.mxu0 %vm308_vm1, %v1098_v9 }
  0xa3   : > { %2189 = vmatmul.mubr.msk.f32.vlgmr.msra.gmra.mxu0 %vm304_vm5, %v2186_v35 }
  0xa4   : > { %1369 = vmatprep.mubr.f32.mxu0 %v2257_v1 }
  0xaa   : > { %v1188_v15 = vpop.permute.xlu0 %1187 }
 0x14b   : > { %v461_v36 = vpop.f32.mrf.mxu1 }
 0x14d   : > { %v463_v39 = vpop.f32.mrf.mxu1 }
 0x14f   : > { %v381_v37 = vpop.f32.mrf.mxu0 }
 0x150   : > { %v462_v40 = vadd.f32 %v461_v36, %v381_v37 }
 0x151   : > { %v383_v41 = vpop.f32.mrf.mxu0 }
 0x152   : > { %v464_v42 = vadd.f32 %v463_v39, %v383_v41 }
 0x153   : > { %v565_v43 = vpop.f32.mrf.mxu0  ;;  %v671_v44 = vpop.f32.mrf.mxu1 }
 0x154   : > { %v570_v45 = vadd.f32 %v565_v43, %v462_v40  ;;  %v2190_v40 = vld [vmem:[%s2749_s4 + $0x10] sm:$0xff] }
 0x155   : > { %v567_v46 = vpop.f32.mrf.mxu0  ;;  %v673_v48 = vpop.f32.mrf.mxu1 }
 0x156   : > { %v571_v49 = vadd.f32 %v567_v46, %v464_v42  ;;  %v676_v51 = vadd.f32 %v671_v44, %v570_v45  ;;  %v1202_v46 = vld [vmem:[%s2749_s4] sm:$0xff] }
 0x157   : > { %v753_v52 = vpop.f32.mrf.mxu0  ;;  %v859_v53 = vpop.f32.mrf.mxu1 }
 0x158   : > { %v677_v54 = vadd.f32 %v673_v48, %v571_v49  ;;  %v758_v55 = vadd.f32 %v753_v52, %v676_v51 }
 0x159   : > { %v755_v56 = vpop.f32.mrf.mxu0  ;;  %v861_v60 = vpop.f32.mrf.mxu1 }
 0x15a   : > { %v759_v57 = vadd.f32 %v755_v56, %v677_v54  ;;  %v864_v59 = vadd.f32 %v859_v53, %v758_v55  ;;  %v1203_v53 = vld [vmem:[%s2749_s4 + $0x8] sm:$0xff]  ;;  %v2196_v54 = vld [vmem:[%s2749_s4 + $0x20] sm:$0xff] }
 0x15b   : > { %v965_v62 = vpop.f32.mrf.mxu0 }
 0x15c   : > { %v865_v63 = vadd.f32 %v861_v60, %v759_v57  ;;  %v970_v2 = vadd.f32 %v965_v62, %v864_v59  ;;  %v2197_v59 = vld [vmem:[%s2749_s4 + $0x28] sm:$0xff]  ;;  %v2200_v60 = vld [vmem:[%s2749_s4 + $0x30] sm:$0xff] }
 0x15d   : > { %v967_v3 = vpop.f32.mrf.mxu0 }
 0x15e   : > { %v971_v0 = vadd.f32 %v967_v3, %v865_v63 }
 0x15f   : > { %v1071_v4 = vpop.f32.mrf.mxu1 }
 0x160   : > { %v1076_v10 = vadd.f32 %v1071_v4, %v970_v2  ;;  %v2201_v4 = vld [vmem:[%s2749_s4 + $0x38] sm:$0xff] }
 0x161   : > { %v1073_v5 = vpop.f32.mrf.mxu1 }
 0x162   : > { %v1077_v16 = vadd.f32 %v1073_v5, %v971_v0  ;;  %v2204_v5 = vld [vmem:[%s2749_s4 + $0x40] sm:$0xff] }
 0x163   : > { %v1177_v11 = vpop.f32.mrf.mxu0 }
 0x164   : > { %v1182_v17 = vadd.f32 %v1177_v11, %v1076_v10 }
 0x165   : > { %v1179_v18 = vpop.f32.mrf.mxu0 }
 0x166   : > { %v1183_v19 = vadd.f32 %v1179_v18, %v1077_v16  ;;  %v1190_v20 = vadd.f32 %v1188_v15, %v1182_v17  ;;  %v2205_v16 = vld [vmem:[%s2749_s4 + $0x48] sm:$0xff]  ;;  %v2208_v17 = vld [vmem:[%s2749_s4 + $0x50] sm:$0xff] }
 0x168   : > { %v1191_v21 = vadd.f32 %v1188_v15, %v1183_v19  ;;  %v2558_v22 = vmax.f32 %v1190_v20, 0.0 }
 0x16a   : > { %1194 = vrot.lane.b32.xlu0 %v2558_v22, %s2258_s27  ;;  %1204 = vrot.lane.b32.xlu1 %v2558_v22, %s2259_s28  ;;  %v2564_v29 = vmax.f32 %v1191_v21, 0.0  ;;  %v2209_v21 = vld [vmem:[%s2749_s4 + $0x58] sm:$0xff] }
 0x16e   : > { %1382 = vrot.lane.b32.xlu0 %v2558_v22, %s2260_s29  ;;  %1206 = vrot.lane.b32.xlu1 %v2564_v29, %s2259_s28 }
 0x172   : > { %1480 = vrot.lane.b32.xlu0 %v2558_v22, %s2261_s30  ;;  %1196 = vrot.lane.b32.xlu1 %v2564_v29, %s2258_s27 }
 0x176   : > { %1668 = vrot.lane.b32.xlu0 %v2558_v22, %s2262_s7  ;;  %1384 = vrot.lane.b32.xlu1 %v2564_v29, %s2260_s29 }
 0x17a   : > { %1766 = vrot.lane.b32.xlu0 %v2558_v22, %s2263_s8  ;;  %1482 = vrot.lane.b32.xlu1 %v2564_v29, %s2261_s30 }
 0x17e   : > { %1864 = vrot.lane.b32.xlu0 %v2558_v22, %s2265_s9  ;;  %1670 = vrot.lane.b32.xlu1 %v2564_v29, %s2262_s7 }
 0x182   : > { %1962 = vrot.lane.b32.xlu0 %v2558_v22, %s2266_s10  ;;  %1768 = vrot.lane.b32.xlu1 %v2564_v29, %s2263_s8 }
 0x186   : > { %2064 = vperm.xlu0 %2246, %v2060_v30   ;;  %1866 = vrot.lane.b32.xlu1 %v2564_v29, %s2265_s9 }
 0x18a   : > { %1964 = vrot.lane.b32.xlu1 %v2564_v29, %s2266_s10 }
 0x18e   : > { %2069 = vperm.xlu1 %2247, %v2061_v31  }
 0x1dc   : > { %v1195_v32 = vpop.permute.xlu0 %1194  ;;  %v1205_v8 = vpop.permute.xlu1 %1204 }
 0x1e0   : > { %v1383_v9 = vpop.permute.xlu0 %1382  ;;  %v1207_v33 = vpop.permute.xlu1 %1206 }
 0x1e1   : > { %v1208_v35 = vsel %vm284_vm3, %v1205_v8, %v1207_v33  ;;  %v1209_v36 = vsel %vm284_vm3, %v1207_v33, %v1205_v8  ;;  %v2213_v8 = vld [vmem:[%s2749_s4 + $0x68] sm:$0xff] }
 0x1e2   : > { %v1210_v37 = vmul.f32 %v1209_v36, %v2390_v23  ;;  %v1211_v39 = vmul.f32 %v1208_v35, %v2393_v24  ;;  %v2191_v24 = vld [vmem:[%s2749_s4 + $0x18] sm:$0xff] }
 0x1e4   : > { %v1481_v41 = vpop.permute.xlu0 %1480  ;;  %1252 = vmatprep.subr.mxu1 %v1211_v39  ;;  %v1197_v42 = vpop.permute.xlu1 %1196 }
 0x1e5   : > { %v1198_v43 = vsel %vm262_vm0, %v1195_v32, %v1197_v42  ;;  %v1199_v44 = vsel %vm262_vm0, %v1197_v42, %v1195_v32  ;;  %1253 = vmatpush1.msra.mxu1 %v1210_v37 }
 0x1e6   : > { %v1200_v45 = vmul.f32 %v1199_v44, %v2370_v13  ;;  %v1201_v23 = vmul.f32 %v1198_v43, %v2373_v14  ;;  %2192 = vmatmul.mubr.msk.f32.vlgmr.msra.gmra.mxu1 %vm1215_vm10, %v2190_v40 }
 0x1e7   : > { %1292 = vmatprep.mubr.f32.mxu1 %v2257_v1 }
 0x1e8   : > { %1335 = vmatprep.subr.mxu0 %v1201_v23  ;;  %v1385_v48 = vpop.permute.xlu1 %1384  ;;  %v1669_v14 = vpop.permute.xlu0 %1668 }
 0x1e9   : > { %v1386_v49 = vsel %vm470_vm2, %v1383_v9, %v1385_v48  ;;  %v1387_v13 = vsel %vm470_vm2, %v1385_v48, %v1383_v9  ;;  %1336 = vmatpush1.msra.mxu0 %v1200_v45  ;;  %v2221_v9 = vld [vmem:[%s2749_s4 + $0x88] sm:$0xff] }
 0x1ea   : > { %v1388_v51 = vmul.f32 %v1387_v13, %v2403_v27  ;;  %v1389_v52 = vmul.f32 %v1386_v49, %v2406_v28  ;;  %2193 = vmatmul.mubr.msk.f32.gmra.mxu1 %vm1215_vm10, %v2191_v24  ;;  %2194 = vmatmul.mubr.msk.f32.vlgmr.msra.gmra.mxu0 %vm1215_vm10, %v1202_v46 }
 0x1eb   : > { %1375 = vmatprep.mubr.f32.mxu0 %v2257_v1  ;;  %1463 = vmatprep.mubr.f32.mxu1 %v2257_v1 }
 0x1ec   : > { %1429 = vmatprep.subr.mxu1 %v1389_v52  ;;  %v1483_v27 = vpop.permute.xlu1 %1482  ;;  %v1767_v62 = vpop.permute.xlu0 %1766 }
 0x1ed   : > { %v1484_v28 = vsel %vm576_vm4, %v1481_v41, %v1483_v27  ;;  %v1485_v55 = vsel %vm576_vm4, %v1483_v27, %v1481_v41  ;;  %1430 = vmatpush1.msra.mxu1 %v1388_v51 }
 0x1ee   : > { %v1486_v56 = vmul.f32 %v1485_v55, %v2417_v34  ;;  %v1487_v57 = vmul.f32 %v1484_v28, %v2424_v38  ;;  %2195 = vmatmul.mubr.msk.f32.gmra.mxu0 %vm1215_vm10, %v1203_v53  ;;  %2198 = vmatmul.mubr.msk.f32.vlgmr.msra.gmra.mxu1 %vm1215_vm10, %v2196_v54 }
 0x1ef   : > { %1617 = vmatprep.subr.mxu1 %v2564_v29  ;;  %1469 = vmatprep.mubr.f32.mxu1 %v2257_v1 }
 0x1f0   : > { %1618 = vmatpush1.msra.mxu1 %v2558_v22  ;;  %1527 = vmatprep.subr.mxu0 %v1487_v57  ;;  %v1671_v34 = vpop.permute.xlu1 %1670  ;;  %v1865_v10 = vpop.permute.xlu0 %1864  ;;  %v2212_v22 = vld [vmem:[%s2749_s4 + $0x60] sm:$0xff] }
 0x1f1   : > { %v1672_v38 = vsel %vm764_vm6, %v1669_v14, %v1671_v34  ;;  %v1673_v63 = vsel %vm764_vm6, %v1671_v34, %v1669_v14  ;;  %1528 = vmatpush1.msra.mxu0 %v1486_v56  ;;  %1561 = vmatprep.mubr.f32.mxu0 %v2257_v1 }
 0x1f2   : > { %v1674_v2 = vmul.f32 %v1672_v38, %v2443_v47  ;;  %v1675_v3 = vmul.f32 %v1673_v63, %v2451_v50  ;;  %2199 = vmatmul.mubr.msk.f32.gmra.mxu1 %vm1215_vm10, %v2197_v59  ;;  %2202 = vmatmul.mubr.msk.f32.vlgmr.msra.gmra.mxu0 %vm1215_vm10, %v2200_v60 }
 0x1f3   : > { %1567 = vmatprep.mubr.f32.mxu0 %v2257_v1  ;;  %1651 = vmatprep.mubr.f32.mxu1 %v2257_v1 }
 0x1f4   : > { %1715 = vmatprep.subr.mxu0 %v1675_v3  ;;  %v1769_v47 = vpop.permute.xlu1 %1768  ;;  %v1963_v29 = vpop.permute.xlu0 %1962 }
 0x1f5   : > { %v1770_v50 = vsel %vm870_vm7, %v1767_v62, %v1769_v47  ;;  %v1771_v0 = vsel %vm870_vm7, %v1769_v47, %v1767_v62  ;;  %1716 = vmatpush1.msra.mxu0 %v1674_v2 }
 0x1f6   : > { %v1772_v11 = vmul.f32 %v1770_v50, %v2473_v58  ;;  %v1773_v15 = vmul.f32 %v1771_v0, %v2481_v61  ;;  %2203 = vmatmul.mubr.msk.f32.gmra.mxu0 %vm1215_vm10, %v2201_v4  ;;  %2206 = vmatmul.mubr.msk.f32.vlgmr.msra.gmra.mxu1 %vm1215_vm10, %v2204_v5 }
 0x1f7   : > { %1657 = vmatprep.mubr.f32.mxu1 %v2257_v1  ;;  %1749 = vmatprep.mubr.f32.mxu0 %v2257_v1 }
 0x1f8   : > { %1813 = vmatprep.subr.mxu1 %v1773_v15  ;;  %v1867_v58 = vpop.permute.xlu1 %1866 }
 0x1f9   : > { %v1868_v61 = vsel %vm976_vm8, %v1865_v10, %v1867_v58  ;;  %v1869_v18 = vsel %vm976_vm8, %v1867_v58, %v1865_v10  ;;  %1814 = vmatpush1.msra.mxu1 %v1772_v11 }
 0x1fa   : > { %v1870_v19 = vmul.f32 %v1868_v61, %v2503_v6  ;;  %v1871_v20 = vmul.f32 %v1869_v18, %v2511_v12  ;;  %2207 = vmatmul.mubr.msk.f32.gmra.mxu1 %vm1215_vm10, %v2205_v16  ;;  %2210 = vmatmul.mubr.msk.f32.vlgmr.msra.gmra.mxu0 %vm1215_vm10, %v2208_v17 }
 0x1fb   : > { %1755 = vmatprep.mubr.f32.mxu0 %v2257_v1  ;;  %1847 = vmatprep.mubr.f32.mxu1 %v2257_v1 }
 0x1fc   : > { %1911 = vmatprep.subr.mxu0 %v1871_v20  ;;  %v1965_v6 = vpop.permute.xlu1 %1964 }
 0x1fd   : > { %v1966_v12 = vsel %vm1082_vm9, %v1963_v29, %v1965_v6  ;;  %v1967_v30 = vsel %vm1082_vm9, %v1965_v6, %v1963_v29  ;;  %1912 = vmatpush1.msra.mxu0 %v1870_v19 }
 0x1fe   : > { %v1968_v31 = vmul.f32 %v1966_v12, %v2532_v25  ;;  %v1969_v32 = vmul.f32 %v1967_v30, %v2535_v26  ;;  %2211 = vmatmul.mubr.msk.f32.gmra.mxu0 %vm1215_vm10, %v2209_v21  ;;  %2214 = vmatmul.mubr.msk.f32.vlgmr.msra.gmra.mxu1 %vm1215_vm10, %v2212_v22  ;;  %v2217_v25 = vld [vmem:[%s2749_s4 + $0x78] sm:$0xff]  ;;  %v2220_v26 = vld [vmem:[%s2749_s4 + $0x80] sm:$0xff] }
 0x1ff   : > { %1853 = vmatprep.mubr.f32.mxu1 %v2257_v1  ;;  %1945 = vmatprep.mubr.f32.mxu0 %v2257_v1 }
 0x200   : > { %2009 = vmatprep.subr.mxu1 %v1969_v32 }
 0x201   : > { %2010 = vmatpush1.msra.mxu1 %v1968_v31  ;;  %v2065_v6 = vpop.permute.xlu0 %2064 }
 0x202   : > { %2215 = vmatmul.mubr.msk.f32.gmra.mxu1 %vm1215_vm10, %v2213_v8  ;;  %2218 = vmatmul.mubr.msk.f32.vlgmr.msra.gmra.mxu0 %vm1215_vm10, %v2216_v7 }
 0x203   : > { %1951 = vmatprep.mubr.f32.mxu0 %v2257_v1  ;;  %2043 = vmatprep.mubr.f32.mxu1 %v2257_v1 }
 0x206   : > { %2219 = vmatmul.mubr.msk.f32.gmra.mxu0 %vm1215_vm10, %v2217_v25  ;;  %2222 = vmatmul.mubr.msk.f32.vlgmr.msra.gmra.mxu1 %vm1215_vm10, %v2220_v26 }
 0x207   : > { %2049 = vmatprep.mubr.f32.mxu1 %v2257_v1 }
 0x20a   : > { %2223 = vmatmul.mubr.msk.f32.gmra.mxu1 %vm1215_vm10, %v2221_v9 }
 0x2a6   : > { %v1288_v33 = vpop.f32.mrf.mxu1 }
 0x2a8   : > { %v1290_v35 = vpop.f32.mrf.mxu1 }
 0x2aa   : > { %v1294_v36 = vpop.f32.mrf.mxu1  ;;  %v1371_v37 = vpop.f32.mrf.mxu0 }
 0x2ab   : > { %v1372_v14 = vadd.f32 %v1371_v37, %v1288_v33 }
 0x2ac   : > { %v1296_v39 = vpop.f32.mrf.mxu1  ;;  %v1373_v40 = vpop.f32.mrf.mxu0 }
 0x2ad   : > { %v1374_v53 = vadd.f32 %v1373_v40, %v1290_v35 }
 0x2ae   : > { %v1377_v41 = vpop.f32.mrf.mxu0  ;;  %v1465_v42 = vpop.f32.mrf.mxu1 }
 0x2af   : > { %v1476_v54 = vadd.f32 %v1465_v42, %v1372_v14  ;;  %v1378_v55 = vadd.f32 %v1377_v41, %v1294_v36  ;;  %v2070_v36 = vpop.permute.xlu1 %2069 }
 0x2b0   : > { %v1379_v43 = vpop.f32.mrf.mxu0  ;;  %v1467_v44 = vpop.f32.mrf.mxu1 }
 0x2b1   : > { %v1477_v56 = vadd.f32 %v1467_v44, %v1374_v53  ;;  %v1380_v62 = vadd.f32 %v1379_v43, %v1296_v39 }
 0x2b2   : > { %v1471_v45 = vpop.f32.mrf.mxu1  ;;  %v1563_v23 = vpop.f32.mrf.mxu0 }
 0x2b3   : > { %v1574_v57 = vadd.f32 %v1563_v23, %v1476_v54  ;;  %v1478_v34 = vadd.f32 %v1471_v45, %v1378_v55 }
 0x2b4   : > { %v1473_v24 = vpop.f32.mrf.mxu1  ;;  %v1565_v1 = vpop.f32.mrf.mxu0 }
 0x2b5   : > { %v1575_v38 = vadd.f32 %v1565_v1, %v1477_v56  ;;  %v1479_v4 = vadd.f32 %v1473_v24, %v1380_v62 }
 0x2b6   : > { %v1569_v46 = vpop.f32.mrf.mxu0  ;;  %v1653_v48 = vpop.f32.mrf.mxu1 }
 0x2b7   : > { %v1664_v63 = vadd.f32 %v1653_v48, %v1574_v57  ;;  %v1576_v5 = vadd.f32 %v1569_v46, %v1478_v34 }
 0x2b8   : > { %v1571_v49 = vpop.f32.mrf.mxu0  ;;  %v1655_v13 = vpop.f32.mrf.mxu1 }
 0x2b9   : > { %v1665_v47 = vadd.f32 %v1655_v13, %v1575_v38  ;;  %v1577_v11 = vadd.f32 %v1571_v49, %v1479_v4 }
 0x2ba   : > { %v1659_v51 = vpop.f32.mrf.mxu1  ;;  %v1751_v52 = vpop.f32.mrf.mxu0 }
 0x2bb   : > { %v1762_v50 = vadd.f32 %v1751_v52, %v1664_v63  ;;  %v1666_v15 = vadd.f32 %v1659_v51, %v1576_v5 }
 0x2bc   : > { %v1661_v27 = vpop.f32.mrf.mxu1  ;;  %v1753_v28 = vpop.f32.mrf.mxu0 }
 0x2bd   : > { %v1763_v16 = vadd.f32 %v1753_v28, %v1665_v47  ;;  %v1667_v18 = vadd.f32 %v1661_v27, %v1577_v11 }
 0x2be   : > { %v1757_v59 = vpop.f32.mrf.mxu0  ;;  %v1849_v60 = vpop.f32.mrf.mxu1 }
 0x2bf   : > { %v1860_v17 = vadd.f32 %v1849_v60, %v1762_v50  ;;  %v1764_v19 = vadd.f32 %v1757_v59, %v1666_v15 }
 0x2c0   : > { %v1759_v2 = vpop.f32.mrf.mxu0  ;;  %v1851_v3 = vpop.f32.mrf.mxu1 }
 0x2c1   : > { %v1861_v20 = vadd.f32 %v1851_v3, %v1763_v16  ;;  %v1765_v12 = vadd.f32 %v1759_v2, %v1667_v18 }
 0x2c2   : > { %v1855_v0 = vpop.f32.mrf.mxu1  ;;  %v1947_v10 = vpop.f32.mrf.mxu0 }
 0x2c3   : > { %v1958_v21 = vadd.f32 %v1947_v10, %v1860_v17  ;;  %v1862_v30 = vadd.f32 %v1855_v0, %v1764_v19 }
 0x2c4   : > { %v1857_v58 = vpop.f32.mrf.mxu1  ;;  %v1949_v61 = vpop.f32.mrf.mxu0 }
 0x2c5   : > { %v1959_v31 = vadd.f32 %v1949_v61, %v1861_v20  ;;  %v1863_v25 = vadd.f32 %v1857_v58, %v1765_v12 }
 0x2c6   : > { %v1953_v22 = vpop.f32.mrf.mxu0  ;;  %v2045_v29 = vpop.f32.mrf.mxu1 }
 0x2c7   : > { %v2056_v32 = vadd.f32 %v2045_v29, %v1958_v21  ;;  %v1960_v26 = vadd.f32 %v1953_v22, %v1862_v30 }
 0x2c8   : > { %v1955_v8 = vpop.f32.mrf.mxu0  ;;  %v2047_v7 = vpop.f32.mrf.mxu1 }
 0x2c9   : > { %v2072_v9 = vadd.f32 %v2065_v6, %v2056_v32  ;;  %v2057_v33 = vadd.f32 %v2047_v7, %v1959_v31  ;;  %v1961_v39 = vadd.f32 %v1955_v8, %v1863_v25 }
 0x2ca   : > { %v2051_v35 = vpop.f32.mrf.mxu1 }
 0x2cb   : > { %v2076_v37 = vmax.f32 %v2072_v9, 0.0  ;;  %v2073_v40 = vadd.f32 %v2065_v6, %v2057_v33  ;;  %v2058_v41 = vadd.f32 %v2051_v35, %v1960_v26 }
 0x2cc   : > { %v2053_v42 = vpop.f32.mrf.mxu1 }
 0x2cd   : > { %2080 = vst [vmem:[%s251_s18] sm:$0xff] %v2076_v37  ;;  %v2077_v43 = vmax.f32 %v2073_v40, 0.0  ;;  %v2059_v44 = vadd.f32 %v2053_v42, %v1961_v39  ;;  %v2074_v45 = vadd.f32 %v2070_v36, %v2058_v41 }
 0x2cf   : > { %2081 = vst [vmem:[%s251_s18 + $0x8] sm:$0xff] %v2077_v43  ;;  %v2075_v23 = vadd.f32 %v2070_v36, %v2059_v44  ;;  %v2078_v24 = vmax.f32 %v2074_v45, 0.0 }
 0x2d1   : > { %v2079_v1 = vmax.f32 %v2075_v23, 0.0  ;;  %2082 = vst [vmem:[%s251_s18 + $0x10] sm:$0xff] %v2078_v24 }
 0x2d3   : > { %2083 = vst [vmem:[%s251_s18 + $0x18] sm:$0xff] %v2079_v1 }
 0x2d4 PF: > { %s16_s21 = sadd.s32 1, %s2255_s21  }
 0x2d5   : > { %p13_p4 = scmp.ge.s32.totalorder %s16_s21, 4  }
 0x2d7   :  { %15 = sbr.rel (!%p13_p4) target bundleno = 1 (0x1), region = 97 }

</bundles_post_ra>
